<compile_context>
chip_gen: v5e
topology: v5e:2x2
jax: 0.10.0
libtpu: 0.0.40
codegen_flags: <defaults>
</compile_context>

<pallas_src>
import functools

import jax
import jax.numpy as jnp
from jax.experimental import pallas as pl
from jax.experimental.pallas import tpu as pltpu


def _round_up(x: int, m: int) -> int:
    return (x + m - 1) // m * m


def _cdiv(a: int, b: int) -> int:
    return (a + b - 1) // b


# ----------------------------- Pallas kernel ------------------------------- #

def _make_bilinear_kernel(x_len, a_len, binary_x, binary_a):
    """Kernel specialized (at build time) for this TabularNet configuration.

    Refs:
      c_ref: (K,)          f32 in SMEM  -- folded bilinear coefficients (resident)
      d_ref: (F, tr, 128)  stream-dtype in VMEM -- feature-major data tile
      o_ref: (tr, 128)     f32 in VMEM  -- lane/sublane-dense output tile
    """

    def feat(d_ref, i):
        return d_ref[i].astype(jnp.float32)          # dense (tr, 128) vregs

    def kernel(c_ref, d_ref, o_ref):
        if binary_x and binary_a:
            # out = c0 + c1*x0 + c2*a0 + c3*x0*a0
            x0 = feat(d_ref, 0)
            a0 = feat(d_ref, 1)
            out = c_ref[0] + c_ref[1] * x0 + c_ref[2] * a0 + c_ref[3] * (x0 * a0)
        elif binary_x:
            # out = sum_j b_j a_j + x0 * sum_j m_j a_j
            x0 = feat(d_ref, 0)
            t1 = None
            t2 = None
            for j in range(a_len):
                aj = feat(d_ref, 1 + j)
                t1 = c_ref[j] * aj if t1 is None else t1 + c_ref[j] * aj
                t2 = (c_ref[a_len + j] * aj if t2 is None
                      else t2 + c_ref[a_len + j] * aj)
            out = t1 + x0 * t2
        elif binary_a:
            # out = sum_i b_i x_i + a0 * sum_i m_i x_i
            a0 = feat(d_ref, x_len)
            t1 = None
            t2 = None
            for i in range(x_len):
                xi = feat(d_ref, i)
                t1 = c_ref[i] * xi if t1 is None else t1 + c_ref[i] * xi
                t2 = (c_ref[x_len + i] * xi if t2 is None
                      else t2 + c_ref[x_len + i] * xi)
            out = t1 + a0 * t2
        else:
            # out = sum_i x_i * (sum_j W[i,j] * a_j)  -- fully unrolled FMAs.
            a = [feat(d_ref, x_len + j) for j in range(a_len)]
            out = None
            for i in range(x_len):
                xi = feat(d_ref, i)
                t = None
                for j in range(a_len):
                    term = c_ref[i * a_len + j] * a[j]
                    t = term if t is None else t + term
                contrib = xi * t
                out = contrib if out is None else out + contrib
        o_ref[...] = out

    return kernel


def _fold_coefficients(weight, x_len, a_len, binary_x, binary_a):
    """Fold the [v, 1-v] binary stacking of nn.Bilinear into scalar coeffs."""
    w = weight.astype(jnp.float32)
    if binary_x and binary_a:                          # w: (2, 2)
        c0 = w[1, 1]
        c1 = w[0, 1] - w[1, 1]
        c2 = w[1, 0] - w[1, 1]
        c3 = w[0, 0] - w[0, 1] - w[1, 0] + w[1, 1]
        return jnp.stack([c0, c1, c2, c3])
    if binary_x:                                       # w: (2, a_len)
        return jnp.concatenate([w[1, :], w[0, :] - w[1, :]])
    if binary_a:                                       # w: (x_len, 2)
        return jnp.concatenate([w[:, 1], w[:, 0] - w[:, 1]])
    return w.reshape(-1)                               # (x_len * a_len,)


def _choose_tile_rows(r, f, stream_bytes, max_tile_rows=None):
    """Rows (of 128 lanes) per grid step: big enough to amortize the ~0.35us
    per-step pipeline overhead, small enough for v7x's 64 MiB VMEM."""
    target_in_bytes = 4 << 20                          # >= ~4 MiB streamed/step
    tr = _round_up(_cdiv(target_in_bytes, f * 128 * stream_bytes), 8)
    tr = max(8, min(tr, 2048))                         # 2048 rows = 256K batch
    if max_tile_rows is not None:
        tr = max(8, min(tr, _round_up(max_tile_rows, 8)))
    tr = min(tr, r)
    # Keep 2x(input block)+2x(output block) within a conservative VMEM budget.
    while tr > 8 and 2 * (f * tr * 128 * stream_bytes + tr * 128 * 4) > (40 << 20):
        tr = max(8, _round_up(tr // 2, 8))
    # Prefer an even grid length (>= 2) so "parallel" balances on v7x's 2 TCs.
    nb = _cdiv(r, tr)
    if nb > 1 and nb % 2 == 1:
        tr = min(tr, _round_up(_cdiv(r, nb + 1), 8))
    return tr


@functools.partial(
    jax.jit,
    static_argnames=("x_len", "a_len", "binary_x", "binary_a",
                     "stream_dtype", "max_tile_rows"))
def _bilinear_forward(data, weight, *, x_len, a_len, binary_x, binary_a,
                      stream_dtype=jnp.bfloat16, max_tile_rows=None):
    """data: (N, x_len + a_len); weight: (in1, in2) f32 -> (N, 1) f32."""
    n, f = data.shape
    assert f == x_len + a_len

    coeffs = _fold_coefficients(weight, x_len, a_len, binary_x, binary_a)

    # Pad the batch only to a vreg boundary (8 sublanes x 128 lanes), never to
    # the tile size; the ragged last grid block is handled by Pallas (OOB reads
    # stay inside the padded allocation, OOB writes are masked).
    n_pad = _round_up(max(n, 1), 8 * 128)
    r = n_pad // 128                                   # rows of 128, multiple of 8

    stream_bytes = jnp.dtype(stream_dtype).itemsize
    tr = _choose_tile_rows(r, f, stream_bytes, max_tile_rows)
    grid = (_cdiv(r, tr),)

    # Feature-major, (8,128)-dense slab: (F, R, 128), streamed in bf16.
    # TODO(synk): if the upstream producer can emit feature-major activations
    # directly, this cast+pad+transpose HBM pass disappears entirely.
    slab = jnp.pad(data.astype(stream_dtype), ((0, n_pad - n), (0, 0)))
    slab = slab.T.reshape(f, r, 128)

    in_block = f * tr * 128 * stream_bytes
    out_block = tr * 128 * 4
    vmem_limit = int(min(48 << 20,
                         max(32 << 20, 2 * (in_block + out_block) + (4 << 20))))

    in1 = 2 if binary_x else x_len
    in2 = 2 if binary_a else a_len
    cost = pl.CostEstimate(
        flops=2 * n_pad * (in1 * in2 + in1),
        transcendentals=0,
        bytes_accessed=f * n_pad * stream_bytes + n_pad * 4 + coeffs.size * 4)

    kernel = _make_bilinear_kernel(x_len, a_len, binary_x, binary_a)

    out = pl.pallas_call(
        kernel,
        out_shape=jax.ShapeDtypeStruct((r, 128), jnp.float32),
        grid=grid,
        in_specs=[
            pl.BlockSpec(memory_space=pltpu.MemorySpace.SMEM),   # coefficients
            pl.BlockSpec((f, tr, 128), lambda i: (0, i, 0)),     # data tiles
        ],
        out_specs=pl.BlockSpec((tr, 128), lambda i: (i, 0)),
        compiler_params=pltpu.CompilerParams(
            dimension_semantics=("parallel",),
            vmem_limit_bytes=vmem_limit),
        cost_estimate=cost,
    )(coeffs, slab)

    return out.reshape(n_pad)[:n].reshape(n, 1)


# ------------------------------ TabularNet --------------------------------- #

class TabularNet:
    """JAX/Pallas port of the PyTorch TabularNet (nn.Bilinear, out_features=1)."""

    def __init__(self, x_len, a_len, num_a, bias=False, key=None,
                 stream_dtype=jnp.bfloat16):
        assert not bias, "reference module is constructed with bias=False"
        self.x_len, self.a_len, self.num_a = x_len, a_len, num_a
        self.stream_dtype = stream_dtype

        if x_len == 1:
            self.in1_dim, self.binary_x = 2, True
        else:
            self.in1_dim, self.binary_x = x_len, False
        if a_len == 1:
            self.in2_dim, self.binary_a = 2, True
            assert num_a == 2
        else:
            self.in2_dim, self.binary_a = a_len, False
            assert num_a == a_len

        # Deterministic init mirroring nn.Bilinear's U(-1/sqrt(in1), 1/sqrt(in1)).
        if key is None:
            key = jax.random.PRNGKey(0)
        bound = 1.0 / float(self.in1_dim) ** 0.5
        self.weight = jax.random.uniform(
            key, (self.in1_dim, self.in2_dim), dtype=jnp.float32,
            minval=-bound, maxval=bound)

    def __call__(self, data, max_tile_rows=None):
        return _bilinear_forward(
            data, self.weight,
            x_len=self.x_len, a_len=self.a_len,
            binary_x=self.binary_x, binary_a=self.binary_a,
            stream_dtype=self.stream_dtype, max_tile_rows=max_tile_rows)

    def is_finite(self):
        return bool(jnp.isfinite(self.weight).all())

    # Pure-JAX reference for verification. With quantize_like_kernel=True the
    # inputs are rounded to the kernel's streaming dtype first, isolating
    # kernel correctness from the bf16-staging approximation.
    def reference(self, data, quantize_like_kernel=False):
        data = data.astype(jnp.float32)
        if quantize_like_kernel:
            data = data.astype(self.stream_dtype).astype(jnp.float32)
        if self.binary_x:
            x0 = data[:, 0]
            x = jnp.stack([x0, 1.0 - x0], axis=1)
        else:
            x = data[:, : self.x_len]
        if self.binary_a:
            a0 = data[:, self.x_len]
            a = jnp.stack([a0, 1.0 - a0], axis=1)
        else:
            a = data[:, self.x_len:]
        return jnp.einsum("ni,ij,nj->n", x, self.weight, a)[:, None]


# --------------------------------- main ------------------------------------ #

if __name__ == "__main__":
    keys = jax.random.split(jax.random.PRNGKey(0), 8)

    # Case 1: binary x & binary a (x_len=1, a_len=1, num_a=2), tiny N.
    net1 = TabularNet(1, 1, 2, key=keys[0])
    d1 = (jax.random.uniform(keys[1], (8, 2)) > 0.5).astype(jnp.float32)
    o1 = jax.block_until_ready(net1(d1))
    assert o1.shape == (8, 1)
    assert jnp.allclose(o1, net1.reference(d1), atol=1e-5, rtol=1e-5)  # 0/1 exact in bf16
    assert net1.is_finite()

    # Case 2: binary x, vector a (x_len=1, a_len=3, num_a=3).
    net2 = TabularNet(1, 3, 3, key=keys[2])
    d2 = jax.random.normal(keys[3], (16, 4), dtype=jnp.float32)
    o2 = jax.block_until_ready(net2(d2))
    assert o2.shape == (16, 1)
    assert jnp.allclose(o2, net2.reference(d2, quantize_like_kernel=True),
                        atol=1e-4, rtol=1e-4)
    assert float(jnp.max(jnp.abs(o2 - net2.reference(d2)))) < 0.5  # bf16 staging sanity

    # Case 3: vector x, binary a (x_len=4, a_len=1, num_a=2).
    net3 = TabularNet(4, 1, 2, key=keys[4])
    d3 = jax.random.normal(keys[5], (16, 5), dtype=jnp.float32)
    o3 = jax.block_until_ready(net3(d3))
    assert o3.shape == (16, 1)
    assert jnp.allclose(o3, net3.reference(d3, quantize_like_kernel=True),
                        atol=1e-4, rtol=1e-4)

    # Case 4: vector x, vector a (x_len=4, a_len=3, num_a=3), N=3000 with a
    # forced small tile so the multi-step grid and ragged last block are run.
    net4 = TabularNet(4, 3, 3, key=keys[6])
    d4 = jax.random.normal(keys[7], (3000, 7), dtype=jnp.float32)
    o4 = jax.block_until_ready(net4(d4, max_tile_rows=16))
    assert o4.shape == (3000, 1)
    assert jnp.allclose(o4, net4.reference(d4, quantize_like_kernel=True),
                        atol=1e-4, rtol=1e-4)
    assert float(jnp.max(jnp.abs(o4 - net4.reference(d4)))) < 0.5
    # Same data through the default (large-tile, single-block) path.
    o4b = jax.block_until_ready(net4(d4))
    assert jnp.allclose(o4b, o4, atol=1e-5, rtol=1e-5)

    print("KERNEL_OK")
</pallas_src>

<mosaic_0001>
module attributes {stable_mosaic.version = 11 : i64} {
  func.func @kernel(%arg0: i32, %arg1: memref<4xf32, #tpu.memory_space<smem>>, %arg2: memref<2x8x128xbf16, #tpu.memory_space<vmem>>, %arg3: memref<8x128xf32, #tpu.memory_space<vmem>>) attributes {dimension_semantics = [#tpu.dimension_semantics<parallel>], iteration_bounds = array<i64: 1>, scalar_prefetch = 0 : i64, scratch_operands = 0 : i64, tpu.core_type = #tpu.core_type<tc>, window_params = [{transform_indices = @transform_0, window_bounds = array<i64: 4>}, {transform_indices = @transform_1, window_bounds = array<i64: 2, 8, 128>}, {transform_indices = @transform_2, window_bounds = array<i64: 8, 128>}]} {
    %c0 = arith.constant 0 : index
    %c0_0 = arith.constant 0 : index
    %c0_1 = arith.constant 0 : index
    %0 = vector.load %arg2[%c0, %c0_0, %c0_1] : memref<2x8x128xbf16, #tpu.memory_space<vmem>>, vector<1x8x128xbf16>
    %1 = vector.shape_cast %0 : vector<1x8x128xbf16> to vector<8x128xbf16>
    %2 = arith.extf %1 : vector<8x128xbf16> to vector<8x128xf32>
    %c1 = arith.constant 1 : index
    %c0_2 = arith.constant 0 : index
    %c0_3 = arith.constant 0 : index
    %3 = vector.load %arg2[%c1, %c0_2, %c0_3] : memref<2x8x128xbf16, #tpu.memory_space<vmem>>, vector<1x8x128xbf16>
    %4 = vector.shape_cast %3 : vector<1x8x128xbf16> to vector<8x128xbf16>
    %5 = arith.extf %4 : vector<8x128xbf16> to vector<8x128xf32>
    %c0_4 = arith.constant 0 : index
    %6 = memref.load %arg1[%c0_4] : memref<4xf32, #tpu.memory_space<smem>>
    %c1_5 = arith.constant 1 : index
    %7 = memref.load %arg1[%c1_5] : memref<4xf32, #tpu.memory_space<smem>>
    %8 = vector.broadcast %7 : f32 to vector<8x128xf32>
    %9 = arith.mulf %8, %2 : vector<8x128xf32>
    %10 = vector.broadcast %6 : f32 to vector<8x128xf32>
    %11 = arith.addf %10, %9 : vector<8x128xf32>
    %c2 = arith.constant 2 : index
    %12 = memref.load %arg1[%c2] : memref<4xf32, #tpu.memory_space<smem>>
    %13 = vector.broadcast %12 : f32 to vector<8x128xf32>
    %14 = arith.mulf %13, %5 : vector<8x128xf32>
    %15 = arith.addf %11, %14 : vector<8x128xf32>
    %c3 = arith.constant 3 : index
    %16 = memref.load %arg1[%c3] : memref<4xf32, #tpu.memory_space<smem>>
    %17 = arith.mulf %2, %5 : vector<8x128xf32>
    %18 = vector.broadcast %16 : f32 to vector<8x128xf32>
    %19 = arith.mulf %18, %17 : vector<8x128xf32>
    %20 = arith.addf %15, %19 : vector<8x128xf32>
    %c0_6 = arith.constant 0 : index
    %c0_7 = arith.constant 0 : index
    %21 = vector.load %arg3[%c0_6, %c0_7] : memref<8x128xf32, #tpu.memory_space<vmem>>, vector<8x128xf32>
    tpu.vector_store %arg3[%c0_6, %c0_7], %20 {strides = array<i32>} : memref<8x128xf32, #tpu.memory_space<vmem>>, vector<8x128xf32>,
    return
  }
  func.func @transform_0(%arg0: i32) -> i32 {
    %c0_i32 = arith.constant 0 : i32
    %c0_i32_0 = arith.constant 0 : i32
    return %c0_i32 : i32
  }
  func.func @transform_1(%arg0: i32) -> (i32, i32, i32) {
    %c0_i32 = arith.constant 0 : i32
    %c0_i32_0 = arith.constant 0 : i32
    %c0_i32_1 = arith.constant 0 : i32
    return %c0_i32, %arg0, %c0_i32_0 : i32, i32, i32
  }
  func.func @transform_2(%arg0: i32) -> (i32, i32) {
    %c0_i32 = arith.constant 0 : i32
    %c0_i32_0 = arith.constant 0 : i32
    return %arg0, %c0_i32 : i32, i32
  }
}

</mosaic_0001>

<bundles_post_ra>
// kernel: _bilinear_forward.1
= control target key start
LH: loop header
LB: loop body
LE: loop exit
PB: predicated region body
PF: predicated region fallthrough
CT: control target
= control target key end

     0   :  { %7 = vsyncpa [#allocation3], 0  ;;  %s73_s12 = smov [#allocation2]   ;;  %s98_s0 = inlined_call_operand.vmem [shape: f32[4], index: 0, kind: input, shape index: {}]   ;;  %s99_s1 = inlined_call_operand.vmem [shape: bf16[2,8,128], index: 1, kind: input, shape index: {}]   ;;  %s100_s2 = inlined_call_operand.vmem [shape: f32[8,128], index: 2, kind: output, shape index: {}]  }
   0x1   :  { %s13_s11 = sshll.u32 %s98_s0, 4  ;;  %s14_s11 = int_to_ptr.vmem [resolvable:$true] %s13_s11 }
   0x2   :  { %16 = dma.vmem_to_smem %s14_s11, 16, %s73_s12, [#allocation3]  }
   0x3   :  { %71 = dma.done.wait [#allocation3], 16  }
   0x4   :  { %72 = vsyncadd [#allocation3], 4294967280 }
   0x5   :  { %23 = sfence }
   0x6   :  { %s29_s13 = sld [smem:[#allocation2]]  ;;  %v55_v0 = vld [vmem:[%s99_s1] sm:$0xff]  }
   0x7   :  { %s51_s16 = sld [smem:[#allocation2 + $0x1]]  ;;  %v57_v1 = vunpack.c.h.bf16 %v55_v0  ;;  %v56_v2 = vunpack.c.l.bf16 %v55_v0 }
   0x8   :  { %s52_s17 = sld [smem:[#allocation2 + $0x2]] }
   0x9   :  { %s53_s18 = sld [smem:[#allocation2 + $0x3]]  ;;  %v40_v3 = vmul.f32 %v57_v1, %v56_v2 }
   0xc   :  { %v33_v5 = vstv %s29_s13 }
   0xd   :  { %v31_v4 = vstv %s51_s16 }
   0xe   :  { %v32_v6 = vmul.f32 %v56_v2, %v31_v4  ;;  %v36_v7 = vstv %s52_s17 }
   0xf   :  { %v37_v8 = vmul.f32 %v57_v1, %v36_v7  ;;  %v41_v9 = vstv %s53_s18 }
  0x10   :  { %v34_v10 = vadd.f32 %v33_v5, %v32_v6  ;;  %v42_v11 = vmul.f32 %v41_v9, %v40_v3 }
  0x12   :  { %v38_v12 = vadd.f32 %v37_v8, %v34_v10 }
  0x14   :  { %v43_v13 = vadd.f32 %v42_v11, %v38_v12 }
  0x16   :  { %44 = vst [vmem:[%s100_s2] sm:$0xff] %v43_v13 }
  0x17   :  { %49 = vsyncpa [#allocation3], 1 }

</bundles_post_ra>
